<compile_context>
chip_gen: v7x
topology: tpu7x:2x2x1
jax: 0.10.0
libtpu: 0.0.40
codegen_flags: <defaults>
</compile_context>

<pallas_src>
import functools

import jax
import jax.numpy as jnp
from jax import lax
from jax.experimental import pallas as pl
from jax.experimental.pallas import tpu as pltpu


def _sigmoid_via_tanh(x):
    # sigmoid(x) == 0.5 * tanh(0.5 * x) + 0.5 : one EUP push + a cheap VPU FMA.
    return 0.5 * jnp.tanh(0.5 * x) + 0.5


def _generator_lstm_kernel(
    z_ref,        # (T*BC, L)    latent, time-major rows (t slow, b fast), f32
    w1_ref,       # (L, H)       fc1 weight (transposed for x @ w)
    b1_ref,       # (1, H)       fc1 bias, f32
    wih_ref,      # (H, 4H)      LSTM input->hidden weight, gate cols (i,f,o,g)
    whh_ref,      # (H, 4H)      LSTM hidden->hidden weight, gate cols (i,f,o,g)
    bias_ref,     # (1, 4H)      b_ih + b_hh, pre-folded + permuted, f32
    w2_ref,       # (H, Opad)    fc2 weight (transposed, lane-padded to 128k)
    b2_ref,       # (1, Opad)    fc2 bias (lane-padded), f32
    out_ref,      # (T*BC, Opad) f32
    gx_scratch,   # VMEM (T*BC, 4H) : precomputed input-side gates
    h_scratch,    # VMEM (T*BC, H)  : hidden-state history (fc2 input)
    *,
    T, BC,
):
    H = whh_ref.shape[0]
    H3 = 3 * H

    # ---- fc1: Linear(latent -> H) + LeakyReLU(0.1) over all T*BC rows ----
    x = jnp.dot(z_ref[...].astype(w1_ref.dtype), w1_ref[...],
                preferred_element_type=jnp.float32) + b1_ref[...]
    x = jnp.where(x >= 0.0, x, 0.1 * x)             # LeakyReLU(negative_slope=0.1)

    # ---- hoisted input-side gate projection: one (T*BC,H)x(H,4H) matmul ----
    gx_scratch[...] = (
        jnp.dot(x.astype(wih_ref.dtype), wih_ref[...],
                preferred_element_type=jnp.float32)
        + bias_ref[...]).astype(gx_scratch.dtype)

    whh = whh_ref[...]                               # resident across the loop

    # ---- serial LSTM recurrence; gate column order is (i, f, o, g) ----
    def step(t, carry):
        h, c = carry                                 # f32 state, (BC, H)
        r0 = pl.multiple_of(t * BC, BC)              # BC is a sublane-tile multiple
        gates = gx_scratch[pl.ds(r0, BC), :].astype(jnp.float32) + jnp.dot(
            h.astype(whh.dtype), whh, preferred_element_type=jnp.float32)
        ifo = _sigmoid_via_tanh(gates[:, :H3])       # one EUP push for i|f|o
        g_g = jnp.tanh(gates[:, H3:])                # one EUP push for g
        i_g = ifo[:, :H]
        f_g = ifo[:, H:2 * H]
        o_g = ifo[:, 2 * H:]
        c_new = f_g * c + i_g * g_g
        h_new = o_g * jnp.tanh(c_new)
        h_scratch[pl.ds(r0, BC), :] = h_new.astype(h_scratch.dtype)
        return h_new, c_new

    h0 = jnp.zeros((BC, H), jnp.float32)
    c0 = jnp.zeros((BC, H), jnp.float32)
    lax.fori_loop(0, T, step, (h0, c0), unroll=True if T <= 16 else 8)

    # ---- hoisted fc2 + sigmoid: one matmul + a single lane-dense store ----
    y = jnp.dot(h_scratch[...].astype(w2_ref.dtype), w2_ref[...],
                preferred_element_type=jnp.float32) + b2_ref[...]
    out_ref[...] = _sigmoid_via_tanh(y).astype(out_ref.dtype)


def _round_up(x, m):
    return (x + m - 1) // m * m


def _permute_gate_cols(w):
    """Reorder gate blocks along the last axis from (i,f,g,o) to (i,f,o,g)."""
    h4 = w.shape[-1]
    h = h4 // 4
    return jnp.concatenate(
        [w[..., :2 * h], w[..., 3 * h:], w[..., 2 * h:3 * h]], axis=-1)


def _whole_array_spec(shape):
    zero = (0,) * len(shape)
    return pl.BlockSpec(shape, lambda i, _z=zero: _z)


def generator_lstm_forward(z, params, *, matmul_dtype=jnp.bfloat16,
                           batch_chunk=None):
    """z: (B, T, latent_dim) float32 -> (B, T, out_dim) float32.

    matmul_dtype: dtype of MXU operands and the gx / h VMEM scratches.
      State (h, c) and all gate nonlinearities always stay float32.
    batch_chunk: rows per grid step along the "parallel" axis (set ~B/2 on
      v7x so both TensorCores get an independent batch slice).
    """
    B, T, L = z.shape
    H = params["w_hh"].shape[0]
    O = params["w2"].shape[1]

    # Sublane-tile row granularity of the scratches (8 for f32, 16 for bf16):
    # keeps every per-step gx load / h store unmasked and tile-aligned.
    sub = 8 * max(1, 4 // jnp.dtype(matmul_dtype).itemsize)

    B_pad = _round_up(max(B, sub), sub)
    if B_pad != B:
        z = jnp.pad(z, ((0, B_pad - B), (0, 0), (0, 0)))

    BC = B_pad if batch_chunk is None else _round_up(max(batch_chunk, sub), sub)
    if B_pad % BC != 0:
        BC = B_pad
    nc = B_pad // BC

    # Lane-dense fc2 output: pad O to a multiple of 128 (sliced off outside).
    O_pad = _round_up(O, 128)
    w2 = jnp.pad(params["w2"], ((0, 0), (0, O_pad - O)))
    b2 = jnp.pad(params["b2"], ((0, 0), (0, O_pad - O)))

    # Gate-column permutation (i,f,g,o)->(i,f,o,g) and bias fold, done once.
    w_ih = _permute_gate_cols(params["w_ih"])
    w_hh = _permute_gate_cols(params["w_hh"])
    bias = _permute_gate_cols(
        (params["b_ih"] + params["b_hh"]).astype(jnp.float32))

    cast = lambda w: w.astype(matmul_dtype)

    # Chunked time-major layout: (nc, T*BC, L), row = t*BC + b within a chunk.
    z_cm = z.reshape(nc, BC, T, L).transpose(0, 2, 1, 3).reshape(nc, T * BC, L)

    kernel = functools.partial(_generator_lstm_kernel, T=T, BC=BC)

    weight_args = (cast(params["w1"]), params["b1"].astype(jnp.float32),
                   cast(w_ih), cast(w_hh), bias,
                   cast(w2), b2.astype(jnp.float32))

    out_cm = pl.pallas_call(
        kernel,
        out_shape=jax.ShapeDtypeStruct((nc, T * BC, O_pad), jnp.float32),
        grid=(nc,),
        in_specs=[pl.BlockSpec((None, T * BC, L), lambda i: (i, 0, 0))]
                 + [_whole_array_spec(w.shape) for w in weight_args],
        out_specs=pl.BlockSpec((None, T * BC, O_pad), lambda i: (i, 0, 0)),
        scratch_shapes=[
            pltpu.VMEM((T * BC, 4 * H), matmul_dtype),   # gx (input-side gates)
            pltpu.VMEM((T * BC, H), matmul_dtype),       # h history (fc2 input)
        ],
        compiler_params=pltpu.CompilerParams(
            dimension_semantics=("parallel",),           # v7x: chunks across TCs
            vmem_limit_bytes=32 * 1024 * 1024,
        ),
    )(z_cm, *weight_args)

    out = (out_cm.reshape(nc, T, BC, O_pad).transpose(0, 2, 1, 3)
           .reshape(B_pad, T, O_pad))
    return out[:B, :, :O]


def init_params(key, latent_dim, internal_dim, out_dim):
    """Deterministic synthetic parameters (PyTorch-style uniform fan-in init)."""
    ks = jax.random.split(key, 8)
    H = internal_dim

    def unif(k, shape, fan_in):
        bound = 1.0 / jnp.sqrt(jnp.float32(fan_in))
        return jax.random.uniform(k, shape, jnp.float32, -bound, bound)

    return {
        # fc1: Linear(latent_dim, internal_dim), stored transposed for x @ w
        "w1": unif(ks[0], (latent_dim, H), latent_dim),
        "b1": unif(ks[1], (1, H), latent_dim),
        # LSTM(internal_dim, internal_dim): weight_ih (4H, H) -> stored (H, 4H)
        "w_ih": unif(ks[2], (H, 4 * H), H),
        "w_hh": unif(ks[3], (H, 4 * H), H),
        "b_ih": unif(ks[4], (1, 4 * H), H),
        "b_hh": unif(ks[5], (1, 4 * H), H),
        # fc2: Linear(internal_dim, out_dim), stored transposed
        "w2": unif(ks[6], (H, out_dim), H),
        "b2": unif(ks[7], (1, out_dim), H),
    }


def _reference_forward(z, p):
    """Pure-JAX f32 reference of the same math (PyTorch gate order i,f,g,o)."""
    x = z @ p["w1"] + p["b1"]
    x = jnp.where(x >= 0.0, x, 0.1 * x)
    B = x.shape[0]
    H = p["w1"].shape[1]

    def step(carry, xt):
        h, c = carry
        gates = xt @ p["w_ih"] + h @ p["w_hh"] + p["b_ih"] + p["b_hh"]
        i = jax.nn.sigmoid(gates[:, :H])
        f = jax.nn.sigmoid(gates[:, H:2 * H])
        g = jnp.tanh(gates[:, 2 * H:3 * H])
        o = jax.nn.sigmoid(gates[:, 3 * H:])
        c = f * c + i * g
        h = o * jnp.tanh(c)
        return (h, c), h

    h0 = jnp.zeros((B, H), jnp.float32)
    _, hs = lax.scan(step, (h0, h0), jnp.transpose(x, (1, 0, 2)))
    hs = jnp.transpose(hs, (1, 0, 2))             # (B, T, H)
    return jax.nn.sigmoid(hs @ p["w2"] + p["b2"])


if __name__ == "__main__":
    B, T = 2, 8                # batch, sequence length
    latent_dim = 16
    internal_dim = 32
    data_shape = (T, 16)       # data_shape[1] = output feature dim
    out_dim = int(data_shape[1])

    key = jax.random.PRNGKey(0)
    k_z, k_p, k_zb = jax.random.split(key, 3)
    z = jax.random.normal(k_z, (B, T, latent_dim), jnp.float32)
    params = init_params(k_p, latent_dim, internal_dim, out_dim)
    ref = _reference_forward(z, params)

    # f32 MXU-operand path (tight check against the pure-JAX reference)
    out_f32 = jax.block_until_ready(
        generator_lstm_forward(z, params, matmul_dtype=jnp.float32))
    assert out_f32.shape == (B, T, out_dim)
    assert jnp.allclose(out_f32, ref, atol=1e-4, rtol=1e-4)

    # default bf16 MXU-operand fast path (state / nonlinearities stay f32)
    out_bf16 = jax.block_until_ready(generator_lstm_forward(z, params))
    assert out_bf16.shape == (B, T, out_dim)
    assert jnp.allclose(out_bf16, ref, atol=1e-1)

    # batch-chunked "parallel" grid path (v7x dual-TC): 2 chunks of 8 rows
    z_big = jax.random.normal(k_zb, (16, T, latent_dim), jnp.float32)
    ref_big = _reference_forward(z_big, params)
    out_big = jax.block_until_ready(
        generator_lstm_forward(z_big, params, matmul_dtype=jnp.float32,
                               batch_chunk=8))
    assert out_big.shape == (16, T, out_dim)
    assert jnp.allclose(out_big, ref_big, atol=1e-4, rtol=1e-4)

    print("KERNEL_OK")
</pallas_src>

<mosaic_0001>
module attributes {stable_mosaic.version = 11 : i64} {
  func.func @_generator_lstm_kernel(%arg0: i32, %arg1: memref<1x64x16xf32, #tpu.memory_space<vmem>>, %arg2: memref<16x32xf32, #tpu.memory_space<vmem>>, %arg3: memref<1x32xf32, #tpu.memory_space<vmem>>, %arg4: memref<32x128xf32, #tpu.memory_space<vmem>>, %arg5: memref<32x128xf32, #tpu.memory_space<vmem>>, %arg6: memref<1x128xf32, #tpu.memory_space<vmem>>, %arg7: memref<32x128xf32, #tpu.memory_space<vmem>>, %arg8: memref<1x128xf32, #tpu.memory_space<vmem>>, %arg9: memref<1x64x128xf32, #tpu.memory_space<vmem>>, %arg10: memref<64x128xf32, #tpu.memory_space<vmem>>, %arg11: memref<64x32xf32, #tpu.memory_space<vmem>>) attributes {dimension_semantics = [#tpu.dimension_semantics<parallel>], iteration_bounds = array<i64: 1>, scalar_prefetch = 0 : i64, scratch_operands = 2 : i64, tpu.core_type = #tpu.core_type<tc>, window_params = [{transform_indices = @transform_0, window_bounds = array<i64: 1, 64, 16>}, {pipeline_mode = #tpu.pipeline_mode<synchronous>, transform_indices = @transform_1, window_bounds = array<i64: 16, 32>}, {pipeline_mode = #tpu.pipeline_mode<synchronous>, transform_indices = @transform_2, window_bounds = array<i64: 1, 32>}, {pipeline_mode = #tpu.pipeline_mode<synchronous>, transform_indices = @transform_3, window_bounds = array<i64: 32, 128>}, {pipeline_mode = #tpu.pipeline_mode<synchronous>, transform_indices = @transform_4, window_bounds = array<i64: 32, 128>}, {pipeline_mode = #tpu.pipeline_mode<synchronous>, transform_indices = @transform_5, window_bounds = array<i64: 1, 128>}, {pipeline_mode = #tpu.pipeline_mode<synchronous>, transform_indices = @transform_6, window_bounds = array<i64: 32, 128>}, {pipeline_mode = #tpu.pipeline_mode<synchronous>, transform_indices = @transform_7, window_bounds = array<i64: 1, 128>}, {transform_indices = @transform_8, window_bounds = array<i64: 1, 64, 128>}]} {
    %c0 = arith.constant 0 : index
    %c0_0 = arith.constant 0 : index
    %c0_1 = arith.constant 0 : index
    %0 = vector.load %arg1[%c0, %c0_0, %c0_1] : memref<1x64x16xf32, #tpu.memory_space<vmem>>, vector<1x64x16xf32>
    %1 = vector.shape_cast %0 : vector<1x64x16xf32> to vector<64x16xf32>
    %c0_2 = arith.constant 0 : index
    %c0_3 = arith.constant 0 : index
    %2 = vector.load %arg2[%c0_2, %c0_3] : memref<16x32xf32, #tpu.memory_space<vmem>>, vector<16x32xf32>
    %cst = arith.constant dense<0.000000e+00> : vector<64x32xf32>
    %3 = tpu.matmul %1, %2, %cst {dimension_numbers = #tpu.dot_dimension_numbers<[1], [0], [0], [1], [0, 0, 1, 1], [], []>} : vector<64x16xf32>, vector<16x32xf32>, vector<64x32xf32> -> vector<64x32xf32>
    %c0_4 = arith.constant 0 : index
    %c0_5 = arith.constant 0 : index
    %4 = vector.load %arg3[%c0_4, %c0_5] : memref<1x32xf32, #tpu.memory_space<vmem>>, vector<1x32xf32>
    %5 = vector.broadcast %4 : vector<1x32xf32> to vector<64x32xf32>
    %6 = arith.addf %3, %5 : vector<64x32xf32>
    %cst_6 = arith.constant 0.000000e+00 : f32
    %7 = vector.broadcast %cst_6 : f32 to vector<64x32xf32>
    %8 = arith.cmpf oge, %6, %7 : vector<64x32xf32>
    %cst_7 = arith.constant 1.000000e-01 : f32
    %9 = vector.broadcast %cst_7 : f32 to vector<64x32xf32>
    %10 = arith.mulf %9, %6 : vector<64x32xf32>
    %11 = arith.select %8, %6, %10 : vector<64x32xi1>, vector<64x32xf32>
    %c0_8 = arith.constant 0 : index
    %c0_9 = arith.constant 0 : index
    %12 = vector.load %arg4[%c0_8, %c0_9] : memref<32x128xf32, #tpu.memory_space<vmem>>, vector<32x128xf32>
    %cst_10 = arith.constant dense<0.000000e+00> : vector<64x128xf32>
    %13 = tpu.matmul %11, %12, %cst_10 {dimension_numbers = #tpu.dot_dimension_numbers<[1], [0], [0], [1], [0, 0, 1, 1], [], []>} : vector<64x32xf32>, vector<32x128xf32>, vector<64x128xf32> -> vector<64x128xf32>
    %c0_11 = arith.constant 0 : index
    %c0_12 = arith.constant 0 : index
    %14 = vector.load %arg6[%c0_11, %c0_12] : memref<1x128xf32, #tpu.memory_space<vmem>>, vector<1x128xf32>
    %15 = vector.broadcast %14 : vector<1x128xf32> to vector<64x128xf32>
    %16 = arith.addf %13, %15 : vector<64x128xf32>
    %c0_13 = arith.constant 0 : index
    %c0_14 = arith.constant 0 : index
    %17 = vector.load %arg10[%c0_13, %c0_14] : memref<64x128xf32, #tpu.memory_space<vmem>>, vector<64x128xf32>
    tpu.vector_store %arg10[%c0_13, %c0_14], %16 {strides = array<i32>} : memref<64x128xf32, #tpu.memory_space<vmem>>, vector<64x128xf32>,
    %c0_15 = arith.constant 0 : index
    %c0_16 = arith.constant 0 : index
    %18 = vector.load %arg5[%c0_15, %c0_16] : memref<32x128xf32, #tpu.memory_space<vmem>>, vector<32x128xf32>
    %cst_17 = arith.constant 0.000000e+00 : f32
    %19 = vector.broadcast %cst_17 : f32 to vector<8x32xf32>
    %cst_18 = arith.constant 0.000000e+00 : f32
    %20 = vector.broadcast %cst_18 : f32 to vector<8x32xf32>
    %c0_i32 = arith.constant 0 : i32
    %c8_i32 = arith.constant 8 : i32
    %21 = arith.muli %c0_i32, %c8_i32 : i32
    %22 = tpu.assume_multiple %21, 8 : i32
    %23 = arith.index_cast %22 : i32 to index
    %c0_19 = arith.constant 0 : index
    %24 = vector.load %arg10[%23, %c0_19] : memref<64x128xf32, #tpu.memory_space<vmem>>, vector<8x128xf32>
    %cst_20 = arith.constant dense<0.000000e+00> : vector<8x128xf32>
    %25 = tpu.matmul %19, %18, %cst_20 {dimension_numbers = #tpu.dot_dimension_numbers<[1], [0], [0], [1], [0, 0, 1, 1], [], []>} : vector<8x32xf32>, vector<32x128xf32>, vector<8x128xf32> -> vector<8x128xf32>
    %26 = arith.addf %24, %25 : vector<8x128xf32>
    %27 = vector.extract_strided_slice %26 {offsets = [0, 0], sizes = [8, 96], strides = [1, 1]} : vector<8x128xf32> to vector<8x96xf32>
    %cst_21 = arith.constant 5.000000e-01 : f32
    %28 = vector.broadcast %cst_21 : f32 to vector<8x96xf32>
    %29 = arith.mulf %28, %27 : vector<8x96xf32>
    %30 = math.tanh %29 : vector<8x96xf32>
    %cst_22 = arith.constant 5.000000e-01 : f32
    %31 = vector.broadcast %cst_22 : f32 to vector<8x96xf32>
    %32 = arith.mulf %31, %30 : vector<8x96xf32>
    %cst_23 = arith.constant 5.000000e-01 : f32
    %33 = vector.broadcast %cst_23 : f32 to vector<8x96xf32>
    %34 = arith.addf %32, %33 : vector<8x96xf32>
    %35 = vector.extract_strided_slice %26 {offsets = [0, 96], sizes = [8, 32], strides = [1, 1]} : vector<8x128xf32> to vector<8x32xf32>
    %36 = math.tanh %35 : vector<8x32xf32>
    %37 = vector.extract_strided_slice %34 {offsets = [0, 0], sizes = [8, 32], strides = [1, 1]} : vector<8x96xf32> to vector<8x32xf32>
    %38 = vector.extract_strided_slice %34 {offsets = [0, 32], sizes = [8, 32], strides = [1, 1]} : vector<8x96xf32> to vector<8x32xf32>
    %39 = vector.extract_strided_slice %34 {offsets = [0, 64], sizes = [8, 32], strides = [1, 1]} : vector<8x96xf32> to vector<8x32xf32>
    %40 = arith.mulf %38, %20 : vector<8x32xf32>
    %41 = arith.mulf %37, %36 : vector<8x32xf32>
    %42 = arith.addf %40, %41 : vector<8x32xf32>
    %43 = math.tanh %42 : vector<8x32xf32>
    %44 = arith.mulf %39, %43 : vector<8x32xf32>
    %45 = arith.index_cast %22 : i32 to index
    %c0_24 = arith.constant 0 : index
    %46 = vector.load %arg11[%45, %c0_24] : memref<64x32xf32, #tpu.memory_space<vmem>>, vector<8x32xf32>
    tpu.vector_store %arg11[%45, %c0_24], %44 {strides = array<i32>} : memref<64x32xf32, #tpu.memory_space<vmem>>, vector<8x32xf32>,
    %c1_i32 = arith.constant 1 : i32
    %c8_i32_25 = arith.constant 8 : i32
    %47 = arith.muli %c1_i32, %c8_i32_25 : i32
    %48 = tpu.assume_multiple %47, 8 : i32
    %49 = arith.index_cast %48 : i32 to index
    %c0_26 = arith.constant 0 : index
    %50 = vector.load %arg10[%49, %c0_26] : memref<64x128xf32, #tpu.memory_space<vmem>>, vector<8x128xf32>
    %cst_27 = arith.constant dense<0.000000e+00> : vector<8x128xf32>
    %51 = tpu.matmul %44, %18, %cst_27 {dimension_numbers = #tpu.dot_dimension_numbers<[1], [0], [0], [1], [0, 0, 1, 1], [], []>} : vector<8x32xf32>, vector<32x128xf32>, vector<8x128xf32> -> vector<8x128xf32>
    %52 = arith.addf %50, %51 : vector<8x128xf32>
    %53 = vector.extract_strided_slice %52 {offsets = [0, 0], sizes = [8, 96], strides = [1, 1]} : vector<8x128xf32> to vector<8x96xf32>
    %cst_28 = arith.constant 5.000000e-01 : f32
    %54 = vector.broadcast %cst_28 : f32 to vector<8x96xf32>
    %55 = arith.mulf %54, %53 : vector<8x96xf32>
    %56 = math.tanh %55 : vector<8x96xf32>
    %cst_29 = arith.constant 5.000000e-01 : f32
    %57 = vector.broadcast %cst_29 : f32 to vector<8x96xf32>
    %58 = arith.mulf %57, %56 : vector<8x96xf32>
    %cst_30 = arith.constant 5.000000e-01 : f32
    %59 = vector.broadcast %cst_30 : f32 to vector<8x96xf32>
    %60 = arith.addf %58, %59 : vector<8x96xf32>
    %61 = vector.extract_strided_slice %52 {offsets = [0, 96], sizes = [8, 32], strides = [1, 1]} : vector<8x128xf32> to vector<8x32xf32>
    %62 = math.tanh %61 : vector<8x32xf32>
    %63 = vector.extract_strided_slice %60 {offsets = [0, 0], sizes = [8, 32], strides = [1, 1]} : vector<8x96xf32> to vector<8x32xf32>
    %64 = vector.extract_strided_slice %60 {offsets = [0, 32], sizes = [8, 32], strides = [1, 1]} : vector<8x96xf32> to vector<8x32xf32>
    %65 = vector.extract_strided_slice %60 {offsets = [0, 64], sizes = [8, 32], strides = [1, 1]} : vector<8x96xf32> to vector<8x32xf32>
    %66 = arith.mulf %64, %42 : vector<8x32xf32>
    %67 = arith.mulf %63, %62 : vector<8x32xf32>
    %68 = arith.addf %66, %67 : vector<8x32xf32>
    %69 = math.tanh %68 : vector<8x32xf32>
    %70 = arith.mulf %65, %69 : vector<8x32xf32>
    %71 = arith.index_cast %48 : i32 to index
    %c0_31 = arith.constant 0 : index
    %72 = vector.load %arg11[%71, %c0_31] : memref<64x32xf32, #tpu.memory_space<vmem>>, vector<8x32xf32>
    tpu.vector_store %arg11[%71, %c0_31], %70 {strides = array<i32>} : memref<64x32xf32, #tpu.memory_space<vmem>>, vector<8x32xf32>,
    %c2_i32 = arith.constant 2 : i32
    %c8_i32_32 = arith.constant 8 : i32
    %73 = arith.muli %c2_i32, %c8_i32_32 : i32
    %74 = tpu.assume_multiple %73, 8 : i32
    %75 = arith.index_cast %74 : i32 to index
    %c0_33 = arith.constant 0 : index
    %76 = vector.load %arg10[%75, %c0_33] : memref<64x128xf32, #tpu.memory_space<vmem>>, vector<8x128xf32>
    %cst_34 = arith.constant dense<0.000000e+00> : vector<8x128xf32>
    %77 = tpu.matmul %70, %18, %cst_34 {dimension_numbers = #tpu.dot_dimension_numbers<[1], [0], [0], [1], [0, 0, 1, 1], [], []>} : vector<8x32xf32>, vector<32x128xf32>, vector<8x128xf32> -> vector<8x128xf32>
    %78 = arith.addf %76, %77 : vector<8x128xf32>
    %79 = vector.extract_strided_slice %78 {offsets = [0, 0], sizes = [8, 96], strides = [1, 1]} : vector<8x128xf32> to vector<8x96xf32>
    %cst_35 = arith.constant 5.000000e-01 : f32
    %80 = vector.broadcast %cst_35 : f32 to vector<8x96xf32>
    %81 = arith.mulf %80, %79 : vector<8x96xf32>
    %82 = math.tanh %81 : vector<8x96xf32>
    %cst_36 = arith.constant 5.000000e-01 : f32
    %83 = vector.broadcast %cst_36 : f32 to vector<8x96xf32>
    %84 = arith.mulf %83, %82 : vector<8x96xf32>
    %cst_37 = arith.constant 5.000000e-01 : f32
    %85 = vector.broadcast %cst_37 : f32 to vector<8x96xf32>
    %86 = arith.addf %84, %85 : vector<8x96xf32>
    %87 = vector.extract_strided_slice %78 {offsets = [0, 96], sizes = [8, 32], strides = [1, 1]} : vector<8x128xf32> to vector<8x32xf32>
    %88 = math.tanh %87 : vector<8x32xf32>
    %89 = vector.extract_strided_slice %86 {offsets = [0, 0], sizes = [8, 32], strides = [1, 1]} : vector<8x96xf32> to vector<8x32xf32>
    %90 = vector.extract_strided_slice %86 {offsets = [0, 32], sizes = [8, 32], strides = [1, 1]} : vector<8x96xf32> to vector<8x32xf32>
    %91 = vector.extract_strided_slice %86 {offsets = [0, 64], sizes = [8, 32], strides = [1, 1]} : vector<8x96xf32> to vector<8x32xf32>
    %92 = arith.mulf %90, %68 : vector<8x32xf32>
    %93 = arith.mulf %89, %88 : vector<8x32xf32>
    %94 = arith.addf %92, %93 : vector<8x32xf32>
    %95 = math.tanh %94 : vector<8x32xf32>
    %96 = arith.mulf %91, %95 : vector<8x32xf32>
    %97 = arith.index_cast %74 : i32 to index
    %c0_38 = arith.constant 0 : index
    %98 = vector.load %arg11[%97, %c0_38] : memref<64x32xf32, #tpu.memory_space<vmem>>, vector<8x32xf32>
    tpu.vector_store %arg11[%97, %c0_38], %96 {strides = array<i32>} : memref<64x32xf32, #tpu.memory_space<vmem>>, vector<8x32xf32>,
    %c3_i32 = arith.constant 3 : i32
    %c8_i32_39 = arith.constant 8 : i32
    %99 = arith.muli %c3_i32, %c8_i32_39 : i32
    %100 = tpu.assume_multiple %99, 8 : i32
    %101 = arith.index_cast %100 : i32 to index
    %c0_40 = arith.constant 0 : index
    %102 = vector.load %arg10[%101, %c0_40] : memref<64x128xf32, #tpu.memory_space<vmem>>, vector<8x128xf32>
    %cst_41 = arith.constant dense<0.000000e+00> : vector<8x128xf32>
    %103 = tpu.matmul %96, %18, %cst_41 {dimension_numbers = #tpu.dot_dimension_numbers<[1], [0], [0], [1], [0, 0, 1, 1], [], []>} : vector<8x32xf32>, vector<32x128xf32>, vector<8x128xf32> -> vector<8x128xf32>
    %104 = arith.addf %102, %103 : vector<8x128xf32>
    %105 = vector.extract_strided_slice %104 {offsets = [0, 0], sizes = [8, 96], strides = [1, 1]} : vector<8x128xf32> to vector<8x96xf32>
    %cst_42 = arith.constant 5.000000e-01 : f32
    %106 = vector.broadcast %cst_42 : f32 to vector<8x96xf32>
    %107 = arith.mulf %106, %105 : vector<8x96xf32>
    %108 = math.tanh %107 : vector<8x96xf32>
    %cst_43 = arith.constant 5.000000e-01 : f32
    %109 = vector.broadcast %cst_43 : f32 to vector<8x96xf32>
    %110 = arith.mulf %109, %108 : vector<8x96xf32>
    %cst_44 = arith.constant 5.000000e-01 : f32
    %111 = vector.broadcast %cst_44 : f32 to vector<8x96xf32>
    %112 = arith.addf %110, %111 : vector<8x96xf32>
    %113 = vector.extract_strided_slice %104 {offsets = [0, 96], sizes = [8, 32], strides = [1, 1]} : vector<8x128xf32> to vector<8x32xf32>
    %114 = math.tanh %113 : vector<8x32xf32>
    %115 = vector.extract_strided_slice %112 {offsets = [0, 0], sizes = [8, 32], strides = [1, 1]} : vector<8x96xf32> to vector<8x32xf32>
    %116 = vector.extract_strided_slice %112 {offsets = [0, 32], sizes = [8, 32], strides = [1, 1]} : vector<8x96xf32> to vector<8x32xf32>
    %117 = vector.extract_strided_slice %112 {offsets = [0, 64], sizes = [8, 32], strides = [1, 1]} : vector<8x96xf32> to vector<8x32xf32>
    %118 = arith.mulf %116, %94 : vector<8x32xf32>
    %119 = arith.mulf %115, %114 : vector<8x32xf32>
    %120 = arith.addf %118, %119 : vector<8x32xf32>
    %121 = math.tanh %120 : vector<8x32xf32>
    %122 = arith.mulf %117, %121 : vector<8x32xf32>
    %123 = arith.index_cast %100 : i32 to index
    %c0_45 = arith.constant 0 : index
    %124 = vector.load %arg11[%123, %c0_45] : memref<64x32xf32, #tpu.memory_space<vmem>>, vector<8x32xf32>
    tpu.vector_store %arg11[%123, %c0_45], %122 {strides = array<i32>} : memref<64x32xf32, #tpu.memory_space<vmem>>, vector<8x32xf32>,
    %c4_i32 = arith.constant 4 : i32
    %c8_i32_46 = arith.constant 8 : i32
    %125 = arith.muli %c4_i32, %c8_i32_46 : i32
    %126 = tpu.assume_multiple %125, 8 : i32
    %127 = arith.index_cast %126 : i32 to index
    %c0_47 = arith.constant 0 : index
    %128 = vector.load %arg10[%127, %c0_47] : memref<64x128xf32, #tpu.memory_space<vmem>>, vector<8x128xf32>
    %cst_48 = arith.constant dense<0.000000e+00> : vector<8x128xf32>
    %129 = tpu.matmul %122, %18, %cst_48 {dimension_numbers = #tpu.dot_dimension_numbers<[1], [0], [0], [1], [0, 0, 1, 1], [], []>} : vector<8x32xf32>, vector<32x128xf32>, vector<8x128xf32> -> vector<8x128xf32>
    %130 = arith.addf %128, %129 : vector<8x128xf32>
    %131 = vector.extract_strided_slice %130 {offsets = [0, 0], sizes = [8, 96], strides = [1, 1]} : vector<8x128xf32> to vector<8x96xf32>
    %cst_49 = arith.constant 5.000000e-01 : f32
    %132 = vector.broadcast %cst_49 : f32 to vector<8x96xf32>
    %133 = arith.mulf %132, %131 : vector<8x96xf32>
    %134 = math.tanh %133 : vector<8x96xf32>
    %cst_50 = arith.constant 5.000000e-01 : f32
    %135 = vector.broadcast %cst_50 : f32 to vector<8x96xf32>
    %136 = arith.mulf %135, %134 : vector<8x96xf32>
    %cst_51 = arith.constant 5.000000e-01 : f32
    %137 = vector.broadcast %cst_51 : f32 to vector<8x96xf32>
    %138 = arith.addf %136, %137 : vector<8x96xf32>
    %139 = vector.extract_strided_slice %130 {offsets = [0, 96], sizes = [8, 32], strides = [1, 1]} : vector<8x128xf32> to vector<8x32xf32>
    %140 = math.tanh %139 : vector<8x32xf32>
    %141 = vector.extract_strided_slice %138 {offsets = [0, 0], sizes = [8, 32], strides = [1, 1]} : vector<8x96xf32> to vector<8x32xf32>
    %142 = vector.extract_strided_slice %138 {offsets = [0, 32], sizes = [8, 32], strides = [1, 1]} : vector<8x96xf32> to vector<8x32xf32>
    %143 = vector.extract_strided_slice %138 {offsets = [0, 64], sizes = [8, 32], strides = [1, 1]} : vector<8x96xf32> to vector<8x32xf32>
    %144 = arith.mulf %142, %120 : vector<8x32xf32>
    %145 = arith.mulf %141, %140 : vector<8x32xf32>
    %146 = arith.addf %144, %145 : vector<8x32xf32>
    %147 = math.tanh %146 : vector<8x32xf32>
    %148 = arith.mulf %143, %147 : vector<8x32xf32>
    %149 = arith.index_cast %126 : i32 to index
    %c0_52 = arith.constant 0 : index
    %150 = vector.load %arg11[%149, %c0_52] : memref<64x32xf32, #tpu.memory_space<vmem>>, vector<8x32xf32>
    tpu.vector_store %arg11[%149, %c0_52], %148 {strides = array<i32>} : memref<64x32xf32, #tpu.memory_space<vmem>>, vector<8x32xf32>,
    %c5_i32 = arith.constant 5 : i32
    %c8_i32_53 = arith.constant 8 : i32
    %151 = arith.muli %c5_i32, %c8_i32_53 : i32
    %152 = tpu.assume_multiple %151, 8 : i32
    %153 = arith.index_cast %152 : i32 to index
    %c0_54 = arith.constant 0 : index
    %154 = vector.load %arg10[%153, %c0_54] : memref<64x128xf32, #tpu.memory_space<vmem>>, vector<8x128xf32>
    %cst_55 = arith.constant dense<0.000000e+00> : vector<8x128xf32>
    %155 = tpu.matmul %148, %18, %cst_55 {dimension_numbers = #tpu.dot_dimension_numbers<[1], [0], [0], [1], [0, 0, 1, 1], [], []>} : vector<8x32xf32>, vector<32x128xf32>, vector<8x128xf32> -> vector<8x128xf32>
    %156 = arith.addf %154, %155 : vector<8x128xf32>
    %157 = vector.extract_strided_slice %156 {offsets = [0, 0], sizes = [8, 96], strides = [1, 1]} : vector<8x128xf32> to vector<8x96xf32>
    %cst_56 = arith.constant 5.000000e-01 : f32
    %158 = vector.broadcast %cst_56 : f32 to vector<8x96xf32>
    %159 = arith.mulf %158, %157 : vector<8x96xf32>
    %160 = math.tanh %159 : vector<8x96xf32>
    %cst_57 = arith.constant 5.000000e-01 : f32
    %161 = vector.broadcast %cst_57 : f32 to vector<8x96xf32>
    %162 = arith.mulf %161, %160 : vector<8x96xf32>
    %cst_58 = arith.constant 5.000000e-01 : f32
    %163 = vector.broadcast %cst_58 : f32 to vector<8x96xf32>
    %164 = arith.addf %162, %163 : vector<8x96xf32>
    %165 = vector.extract_strided_slice %156 {offsets = [0, 96], sizes = [8, 32], strides = [1, 1]} : vector<8x128xf32> to vector<8x32xf32>
    %166 = math.tanh %165 : vector<8x32xf32>
    %167 = vector.extract_strided_slice %164 {offsets = [0, 0], sizes = [8, 32], strides = [1, 1]} : vector<8x96xf32> to vector<8x32xf32>
    %168 = vector.extract_strided_slice %164 {offsets = [0, 32], sizes = [8, 32], strides = [1, 1]} : vector<8x96xf32> to vector<8x32xf32>
    %169 = vector.extract_strided_slice %164 {offsets = [0, 64], sizes = [8, 32], strides = [1, 1]} : vector<8x96xf32> to vector<8x32xf32>
    %170 = arith.mulf %168, %146 : vector<8x32xf32>
    %171 = arith.mulf %167, %166 : vector<8x32xf32>
    %172 = arith.addf %170, %171 : vector<8x32xf32>
    %173 = math.tanh %172 : vector<8x32xf32>
    %174 = arith.mulf %169, %173 : vector<8x32xf32>
    %175 = arith.index_cast %152 : i32 to index
    %c0_59 = arith.constant 0 : index
    %176 = vector.load %arg11[%175, %c0_59] : memref<64x32xf32, #tpu.memory_space<vmem>>, vector<8x32xf32>
    tpu.vector_store %arg11[%175, %c0_59], %174 {strides = array<i32>} : memref<64x32xf32, #tpu.memory_space<vmem>>, vector<8x32xf32>,
    %c6_i32 = arith.constant 6 : i32
    %c8_i32_60 = arith.constant 8 : i32
    %177 = arith.muli %c6_i32, %c8_i32_60 : i32
    %178 = tpu.assume_multiple %177, 8 : i32
    %179 = arith.index_cast %178 : i32 to index
    %c0_61 = arith.constant 0 : index
    %180 = vector.load %arg10[%179, %c0_61] : memref<64x128xf32, #tpu.memory_space<vmem>>, vector<8x128xf32>
    %cst_62 = arith.constant dense<0.000000e+00> : vector<8x128xf32>
    %181 = tpu.matmul %174, %18, %cst_62 {dimension_numbers = #tpu.dot_dimension_numbers<[1], [0], [0], [1], [0, 0, 1, 1], [], []>} : vector<8x32xf32>, vector<32x128xf32>, vector<8x128xf32> -> vector<8x128xf32>
    %182 = arith.addf %180, %181 : vector<8x128xf32>
    %183 = vector.extract_strided_slice %182 {offsets = [0, 0], sizes = [8, 96], strides = [1, 1]} : vector<8x128xf32> to vector<8x96xf32>
    %cst_63 = arith.constant 5.000000e-01 : f32
    %184 = vector.broadcast %cst_63 : f32 to vector<8x96xf32>
    %185 = arith.mulf %184, %183 : vector<8x96xf32>
    %186 = math.tanh %185 : vector<8x96xf32>
    %cst_64 = arith.constant 5.000000e-01 : f32
    %187 = vector.broadcast %cst_64 : f32 to vector<8x96xf32>
    %188 = arith.mulf %187, %186 : vector<8x96xf32>
    %cst_65 = arith.constant 5.000000e-01 : f32
    %189 = vector.broadcast %cst_65 : f32 to vector<8x96xf32>
    %190 = arith.addf %188, %189 : vector<8x96xf32>
    %191 = vector.extract_strided_slice %182 {offsets = [0, 96], sizes = [8, 32], strides = [1, 1]} : vector<8x128xf32> to vector<8x32xf32>
    %192 = math.tanh %191 : vector<8x32xf32>
    %193 = vector.extract_strided_slice %190 {offsets = [0, 0], sizes = [8, 32], strides = [1, 1]} : vector<8x96xf32> to vector<8x32xf32>
    %194 = vector.extract_strided_slice %190 {offsets = [0, 32], sizes = [8, 32], strides = [1, 1]} : vector<8x96xf32> to vector<8x32xf32>
    %195 = vector.extract_strided_slice %190 {offsets = [0, 64], sizes = [8, 32], strides = [1, 1]} : vector<8x96xf32> to vector<8x32xf32>
    %196 = arith.mulf %194, %172 : vector<8x32xf32>
    %197 = arith.mulf %193, %192 : vector<8x32xf32>
    %198 = arith.addf %196, %197 : vector<8x32xf32>
    %199 = math.tanh %198 : vector<8x32xf32>
    %200 = arith.mulf %195, %199 : vector<8x32xf32>
    %201 = arith.index_cast %178 : i32 to index
    %c0_66 = arith.constant 0 : index
    %202 = vector.load %arg11[%201, %c0_66] : memref<64x32xf32, #tpu.memory_space<vmem>>, vector<8x32xf32>
    tpu.vector_store %arg11[%201, %c0_66], %200 {strides = array<i32>} : memref<64x32xf32, #tpu.memory_space<vmem>>, vector<8x32xf32>,
    %c7_i32 = arith.constant 7 : i32
    %c8_i32_67 = arith.constant 8 : i32
    %203 = arith.muli %c7_i32, %c8_i32_67 : i32
    %204 = tpu.assume_multiple %203, 8 : i32
    %205 = arith.index_cast %204 : i32 to index
    %c0_68 = arith.constant 0 : index
    %206 = vector.load %arg10[%205, %c0_68] : memref<64x128xf32, #tpu.memory_space<vmem>>, vector<8x128xf32>
    %cst_69 = arith.constant dense<0.000000e+00> : vector<8x128xf32>
    %207 = tpu.matmul %200, %18, %cst_69 {dimension_numbers = #tpu.dot_dimension_numbers<[1], [0], [0], [1], [0, 0, 1, 1], [], []>} : vector<8x32xf32>, vector<32x128xf32>, vector<8x128xf32> -> vector<8x128xf32>
    %208 = arith.addf %206, %207 : vector<8x128xf32>
    %209 = vector.extract_strided_slice %208 {offsets = [0, 0], sizes = [8, 96], strides = [1, 1]} : vector<8x128xf32> to vector<8x96xf32>
    %cst_70 = arith.constant 5.000000e-01 : f32
    %210 = vector.broadcast %cst_70 : f32 to vector<8x96xf32>
    %211 = arith.mulf %210, %209 : vector<8x96xf32>
    %212 = math.tanh %211 : vector<8x96xf32>
    %cst_71 = arith.constant 5.000000e-01 : f32
    %213 = vector.broadcast %cst_71 : f32 to vector<8x96xf32>
    %214 = arith.mulf %213, %212 : vector<8x96xf32>
    %cst_72 = arith.constant 5.000000e-01 : f32
    %215 = vector.broadcast %cst_72 : f32 to vector<8x96xf32>
    %216 = arith.addf %214, %215 : vector<8x96xf32>
    %217 = vector.extract_strided_slice %208 {offsets = [0, 96], sizes = [8, 32], strides = [1, 1]} : vector<8x128xf32> to vector<8x32xf32>
    %218 = math.tanh %217 : vector<8x32xf32>
    %219 = vector.extract_strided_slice %216 {offsets = [0, 0], sizes = [8, 32], strides = [1, 1]} : vector<8x96xf32> to vector<8x32xf32>
    %220 = vector.extract_strided_slice %216 {offsets = [0, 32], sizes = [8, 32], strides = [1, 1]} : vector<8x96xf32> to vector<8x32xf32>
    %221 = vector.extract_strided_slice %216 {offsets = [0, 64], sizes = [8, 32], strides = [1, 1]} : vector<8x96xf32> to vector<8x32xf32>
    %222 = arith.mulf %220, %198 : vector<8x32xf32>
    %223 = arith.mulf %219, %218 : vector<8x32xf32>
    %224 = arith.addf %222, %223 : vector<8x32xf32>
    %225 = math.tanh %224 : vector<8x32xf32>
    %226 = arith.mulf %221, %225 : vector<8x32xf32>
    %227 = arith.index_cast %204 : i32 to index
    %c0_73 = arith.constant 0 : index
    %228 = vector.load %arg11[%227, %c0_73] : memref<64x32xf32, #tpu.memory_space<vmem>>, vector<8x32xf32>
    tpu.vector_store %arg11[%227, %c0_73], %226 {strides = array<i32>} : memref<64x32xf32, #tpu.memory_space<vmem>>, vector<8x32xf32>,
    %c8_i32_74 = arith.constant 8 : i32
    %c0_75 = arith.constant 0 : index
    %c0_76 = arith.constant 0 : index
    %229 = vector.load %arg11[%c0_75, %c0_76] : memref<64x32xf32, #tpu.memory_space<vmem>>, vector<64x32xf32>
    %c0_77 = arith.constant 0 : index
    %c0_78 = arith.constant 0 : index
    %230 = vector.load %arg7[%c0_77, %c0_78] : memref<32x128xf32, #tpu.memory_space<vmem>>, vector<32x128xf32>
    %cst_79 = arith.constant dense<0.000000e+00> : vector<64x128xf32>
    %231 = tpu.matmul %229, %230, %cst_79 {dimension_numbers = #tpu.dot_dimension_numbers<[1], [0], [0], [1], [0, 0, 1, 1], [], []>} : vector<64x32xf32>, vector<32x128xf32>, vector<64x128xf32> -> vector<64x128xf32>
    %c0_80 = arith.constant 0 : index
    %c0_81 = arith.constant 0 : index
    %232 = vector.load %arg8[%c0_80, %c0_81] : memref<1x128xf32, #tpu.memory_space<vmem>>, vector<1x128xf32>
    %233 = vector.broadcast %232 : vector<1x128xf32> to vector<64x128xf32>
    %234 = arith.addf %231, %233 : vector<64x128xf32>
    %cst_82 = arith.constant 5.000000e-01 : f32
    %235 = vector.broadcast %cst_82 : f32 to vector<64x128xf32>
    %236 = arith.mulf %235, %234 : vector<64x128xf32>
    %237 = math.tanh %236 : vector<64x128xf32>
    %cst_83 = arith.constant 5.000000e-01 : f32
    %238 = vector.broadcast %cst_83 : f32 to vector<64x128xf32>
    %239 = arith.mulf %238, %237 : vector<64x128xf32>
    %cst_84 = arith.constant 5.000000e-01 : f32
    %240 = vector.broadcast %cst_84 : f32 to vector<64x128xf32>
    %241 = arith.addf %239, %240 : vector<64x128xf32>
    %c0_85 = arith.constant 0 : index
    %c0_86 = arith.constant 0 : index
    %c0_87 = arith.constant 0 : index
    %242 = vector.load %arg9[%c0_85, %c0_86, %c0_87] : memref<1x64x128xf32, #tpu.memory_space<vmem>>, vector<1x64x128xf32>
    %243 = vector.shape_cast %242 : vector<1x64x128xf32> to vector<64x128xf32>
    %244 = vector.shape_cast %241 : vector<64x128xf32> to vector<1x64x128xf32>
    tpu.vector_store %arg9[%c0_85, %c0_86, %c0_87], %244 {strides = array<i32>} : memref<1x64x128xf32, #tpu.memory_space<vmem>>, vector<1x64x128xf32>,
    return
  }
  func.func @transform_0(%arg0: i32) -> (i32, i32, i32) {
    %c0_i32 = arith.constant 0 : i32
    %c0_i32_0 = arith.constant 0 : i32
    %c0_i32_1 = arith.constant 0 : i32
    return %arg0, %c0_i32, %c0_i32_0 : i32, i32, i32
  }
  func.func @transform_1(%arg0: i32) -> (i32, i32) {
    %c0_i32 = arith.constant 0 : i32
    %c0_i32_0 = arith.constant 0 : i32
    %c0_i32_1 = arith.constant 0 : i32
    return %c0_i32, %c0_i32_0 : i32, i32
  }
  func.func @transform_2(%arg0: i32) -> (i32, i32) {
    %c0_i32 = arith.constant 0 : i32
    %c0_i32_0 = arith.constant 0 : i32
    %c0_i32_1 = arith.constant 0 : i32
    return %c0_i32, %c0_i32_0 : i32, i32
  }
  func.func @transform_3(%arg0: i32) -> (i32, i32) {
    %c0_i32 = arith.constant 0 : i32
    %c0_i32_0 = arith.constant 0 : i32
    %c0_i32_1 = arith.constant 0 : i32
    return %c0_i32, %c0_i32_0 : i32, i32
  }
  func.func @transform_4(%arg0: i32) -> (i32, i32) {
    %c0_i32 = arith.constant 0 : i32
    %c0_i32_0 = arith.constant 0 : i32
    %c0_i32_1 = arith.constant 0 : i32
    return %c0_i32, %c0_i32_0 : i32, i32
  }
  func.func @transform_5(%arg0: i32) -> (i32, i32) {
    %c0_i32 = arith.constant 0 : i32
    %c0_i32_0 = arith.constant 0 : i32
    %c0_i32_1 = arith.constant 0 : i32
    return %c0_i32, %c0_i32_0 : i32, i32
  }
  func.func @transform_6(%arg0: i32) -> (i32, i32) {
    %c0_i32 = arith.constant 0 : i32
    %c0_i32_0 = arith.constant 0 : i32
    %c0_i32_1 = arith.constant 0 : i32
    return %c0_i32, %c0_i32_0 : i32, i32
  }
  func.func @transform_7(%arg0: i32) -> (i32, i32) {
    %c0_i32 = arith.constant 0 : i32
    %c0_i32_0 = arith.constant 0 : i32
    %c0_i32_1 = arith.constant 0 : i32
    return %c0_i32, %c0_i32_0 : i32, i32
  }
  func.func @transform_8(%arg0: i32) -> (i32, i32, i32) {
    %c0_i32 = arith.constant 0 : i32
    %c0_i32_0 = arith.constant 0 : i32
    %c0_i32_1 = arith.constant 0 : i32
    return %arg0, %c0_i32, %c0_i32_0 : i32, i32, i32
  }
}

</mosaic_0001>

<bundles_post_ra>
// kernel: tpu_custom_call.1
= control target key start
LH: loop header
LB: loop body
LE: loop exit
PB: predicated region body
PF: predicated region fallthrough
CT: control target
= control target key end

     0   :  { %13 = vsyncpa [#allocation5], 0  ;;  %s2148_s0 = inlined_call_operand.vmem [shape: f32[1,64,16], index: 0, kind: input, shape index: {}]   ;;  %s2149_s1 = inlined_call_operand.hbm [shape: f32[16,32], index: 1, kind: input, shape index: {}]   ;;  %s2150_s2 = inlined_call_operand.vmem [shape: f32[1,32], index: 2, kind: input, shape index: {}]   ;;  %s2151_s3 = inlined_call_operand.vmem [shape: f32[32,128], index: 3, kind: input, shape index: {}]   ;;  %s2152_s4 = inlined_call_operand.vmem [shape: f32[32,128], index: 4, kind: input, shape index: {}]   ;;  %s2153_s5 = inlined_call_operand.vmem [shape: f32[1,128], index: 5, kind: input, shape index: {}]   ;;  %s2154_s6 = inlined_call_operand.vmem [shape: f32[32,128], index: 6, kind: input, shape index: {}]   ;;  %s2155_s7 = inlined_call_operand.vmem [shape: f32[1,128], index: 7, kind: input, shape index: {}]   ;;  %s2156_s8 = inlined_call_operand.hbm [shape: f32[1,64,128], index: 8, kind: output, shape index: {}]  }
   0x1   :  { %14 = vsyncpa [#allocation6], 0  ;;  %s1839_s27 = smov [#allocation4]   ;;  %s1791_s9 = scalar_lea.hbm %s2149_s1, 256 }
   0x2   :  { %s22_s28 = sshll.u32 %s1839_s27, 4  ;;  %p1792_p0 = scmp.ne.s32.totalorder %s2149_s1, %s1791_s9  ;;  %s23_s28 = int_to_ptr.vmem [resolvable:$true] %s22_s28 }
   0x3   :  { %p1795_p1 = scmp.lt.u32.totalorder %s1791_s9, %s2149_s1 }
   0x5   :  { %p1797_p2 = pnand %p1795_p1, %p1792_p0 }
   0x7   :  { %1800 = shalt.err (!%p1797_p2)
}
   0x8   :  { %s1801_s14 = scalar_lea.vmem %s23_s28, 256  ;;  %p1806_p4 = scmp.lt.s32.totalorder %s23_s28, %s23_s28 }
   0x9   :  { %p1802_p3 = scmp.ne.s32.totalorder %s23_s28, %s1801_s14  ;;  %p1807_p5 = scmp.lt.s32.totalorder %s1801_s14, %s1801_s14 }
   0xb   :  { %p1808_p6 = por %p1807_p5, %p1806_p4 }
   0xd   :  { %p1809_p7 = pnand %p1808_p6, %p1802_p3 }
   0xf   :  { %1812 = shalt.err (!%p1809_p7)
}
  0x10   :  { %s1840_s15 = smov 128   ;;  %s1841_s16 = smov 8  }
  0x11   :  { %28 = dma.hbm_to_vmem [thread:$0]  %s2149_s1, 256, %s23_s28, [#allocation5], %s1840_s15, %s1840_s15, %s1841_s16  }
  0x12   :  { %1835 = dma.done.wait [#allocation5], 256  }
  0x13   :  { %1836 = vsyncadd [#allocation5], 4294967040  ;;  %vm61_vm0 = vcmask 130048   ;;  %v52_v0 = vld [vmem:[#allocation4] sm:$0xff]  ;;  %v53_v1 = vld [vmem:[#allocation4 + $0x8] sm:$0xff]  ;;  %v1842_v19 = vmov 0.0|0.0  }
  0x14   :  { %v44_v2 = vld [vmem:[%s2148_s0] sm:$0xff]  ;;  %v1648_v3 = vpack.c.bf16 %v53_v1, %v52_v0  ;;  %v216_v6 = vld [vmem:[%s2151_s3 + $0x8] sm:$0xff]  ;;  %v46_v10 = vld [vmem:[%s2148_s0 + $0x10] sm:$0xff]  ;;  %vm1843_vm1 = vmmov 0   ;;  %v1844_v24 = vmov 0.0   ;;  %vm226_vm2 = vcmask 261120  }
  0x15   :  { %1508 = vmatprep.mubr.msk.f32.mxu0 %vm61_vm0, %v44_v2  ;;  %v48_v4 = vld [vmem:[%s2148_s0 + $0x20] sm:$0xff]  ;;  %v45_v7 = vld [vmem:[%s2148_s0 + $0x8] sm:$0xff]  ;;  %v50_v11 = vld [vmem:[%s2148_s0 + $0x30] sm:$0xff]  ;;  %s1846_s29 = smov 64  }
  0x16   :  { %1649 = vmatprep.subr.bf16.mxu0 %v1648_v3  ;;  %1716 = vmatprep.subr.bf16.mxu1 %v1648_v3  ;;  %v215_v5 = vld [vmem:[%s2151_s3] sm:$0xff]  ;;  %v49_v8 = vld [vmem:[%s2148_s0 + $0x28] sm:$0xff]  ;;  %v47_v12 = vld [vmem:[%s2148_s0 + $0x18] sm:$0xff] }
  0x17   :  { %1651 = vmatpush3.bf16.msra.mxu0 %v1648_v3  ;;  %1717 = vmatpush3.bf16.msra.mxu1 %v1648_v3  ;;  %v1652_v9 = vpack.c.bf16 %v216_v6, %v215_v5  ;;  %v51_v13 = vld [vmem:[%s2148_s0 + $0x38] sm:$0xff]  ;;  %v364_v14 = vld [vmem:[%s2152_s4] sm:$0xff]  ;;  %v365_v15 = vld [vmem:[%s2152_s4 + $0x8] sm:$0xff] }
  0x18   :  { %1514 = vmatprep.mubr.msk.f32.mxu1 %vm61_vm0, %v48_v4  ;;  %v217_v16 = vld [vmem:[%s2151_s3 + $0x10] sm:$0xff]  ;;  %v218_v17 = vld [vmem:[%s2151_s3 + $0x18] sm:$0xff]  ;;  %v1958_v18 = vpack.c.bf16 %v365_v15, %v364_v14  ;;  %1660 = vmatprep.subr.bf16.mxu0 %v1842_v19  ;;  %v1396_v25 = vld [vmem:[%s2150_s2] ss:$0 sm:$0xff] }
  0x19   :  { %1653 = vmatprep.subr.bf16.mxu1 %v1652_v9  ;;  %v1656_v20 = vpack.c.bf16 %v218_v17, %v217_v16  ;;  %v366_v21 = vld [vmem:[%s2152_s4 + $0x10] sm:$0xff]  ;;  %v367_v22 = vld [vmem:[%s2152_s4 + $0x18] sm:$0xff]  ;;  %v1405_v60 = vld [vmem:[%s2153_s5] ss:$0 sm:$0xff]  ;;  %s1845_s5 = smov 32  }
  0x1a   :  { %1509 = vmatmul.mubr.msk.f32.vlgmr.msra.gmra.mrb[0].mxu0 %vm61_vm0, %v45_v7  ;;  %1515 = vmatmul.mubr.msk.f32.vlgmr.msra.gmra.mrb[0].mxu1 %vm61_vm0, %v49_v8  ;;  %v1969_v23 = vpack.c.bf16 %v367_v22, %v366_v21 }
  0x1b   :  { %1511 = vmatprep.mubr.msk.f32.mxu0 %vm61_vm0, %v46_v10  ;;  %1517 = vmatprep.mubr.msk.f32.mxu1 %vm61_vm0, %v50_v11 }
  0x1c   :  { %1655 = vmatpush3.bf16.msra.mxu1 %v1652_v9  ;;  %1662 = vmatpush3.bf16.msra.mxu0 %v1958_v18 }
  0x1d   :  { %1657 = vmatprep.subr.bf16.mxu1 %v1656_v20  ;;  %1663 = vmatprep.subr.bf16.mxu0 %v1842_v19 }
  0x1e   :  { %1512 = vmatmul.mubr.msk.f32.gmra.mrb[2].mxu0 %vm61_vm0, %v47_v12  ;;  %1518 = vmatmul.mubr.msk.f32.gmra.mrb[2].mxu1 %vm61_vm0, %v51_v13 }
  0x1f   :  { %1548 = vmatprep.mubr.msk.f32.mxu0 %vm1843_vm1, %v1844_v24 }
  0x20   :  { %1659 = vmatpush3.bf16.msra.mxu1 %v1656_v20  ;;  %1665 = vmatpush3.bf16.msra.mxu0 %v1969_v23 }
  0x21   :  { %1666 = vmatprep.subr.bf16.mxu1 %v1842_v19  ;;  %1672 = vmatprep.subr.bf16.mxu0 %v1842_v19 }
  0x23   :  { %1549 = vmatmul.mubr.f32.vlgmr.msra.gmra.mrb[4].mxu0 %v1844_v24 }
  0x24   :  { %1674 = vmatpush3.bf16.msra.mxu0 %v1958_v18  ;;  %1570 = vmatprep.mubr.msk.f32.mxu0 %vm1843_vm1, %v1844_v24 }
  0x25   :  { %1675 = vmatprep.subr.bf16.mxu0 %v1842_v19 }
  0x28   :  { %1677 = vmatpush3.bf16.msra.mxu0 %v1969_v23 }
  0x29   :  { %1684 = vmatprep.subr.bf16.mxu0 %v1842_v19 }
  0xed   :  { %v1510_v26 = vpop.f32.mrb[0].mxu0  ;;  %v1516_v27 = vpop.f32.mrb[0].mxu1 }
  0xee   :  { %v158_v28 = vadd.f32 %v1510_v26, %v1396_v25  ;;  %v152_v29 = vpop.f32.mrb[1].mxu0  ;;  %v172_v30 = vpop.f32.mrb[1].mxu1  ;;  %v178_v39 = vadd.f32 %v1516_v27, %v1396_v25 }
  0xef   :  { %v153_v31 = vadd.f32 %v1396_v25, %v152_v29  ;;  %v173_v32 = vadd.f32 %v1396_v25, %v172_v30 }
  0xf0   :  { %v200_v33 = vmul.f32 0.1, %v158_v28  ;;  %vm192_vm3 = vcmp.ge.f32.partialorder %v158_v28, 0.0  ;;  %v204_v48 = vmul.f32 0.1, %v178_v39  ;;  %vm196_vm8 = vcmp.ge.f32.partialorder %v178_v39, 0.0 }
  0xf1   :  { %vm191_vm4 = vcmp.ge.f32.partialorder %v153_v31, 0.0  ;;  %v199_v34 = vmul.f32 0.1, %v153_v31  ;;  %v1513_v35 = vpop.f32.mrb[2].mxu0  ;;  %v1519_v36 = vpop.f32.mrb[2].mxu1  ;;  %vm195_vm6 = vcmp.ge.f32.partialorder %v173_v32, 0.0 }
  0xf2   :  { %v168_v37 = vadd.f32 %v1513_v35, %v1396_v25  ;;  %v162_v38 = vpop.f32.mrb[3].mxu0  ;;  %v182_v40 = vpop.f32.mrb[3].mxu1  ;;  %v203_v43 = vmul.f32 0.1, %v173_v32  ;;  %v208_v45 = vsel %vm192_vm3, %v158_v28, %v200_v33  ;;  %v188_v49 = vadd.f32 %v1519_v36, %v1396_v25 }
  0xf3   :  { %v207_v41 = vsel %vm191_vm4, %v153_v31, %v199_v34  ;;  %v163_v42 = vadd.f32 %v1396_v25, %v162_v38  ;;  %v183_v44 = vadd.f32 %v1396_v25, %v182_v40  ;;  %v212_v55 = vsel %vm196_vm8, %v178_v39, %v204_v48 }
  0xf4   :  { %1528 = vmatprep.mubr.msk.f32.mxu1 %vm226_vm2, %v207_v41  ;;  %vm194_vm5 = vcmp.ge.f32.partialorder %v168_v37, 0.0  ;;  %v202_v46 = vmul.f32 0.1, %v168_v37  ;;  %v211_v53 = vsel %vm195_vm6, %v173_v32, %v203_v43  ;;  %v206_v54 = vmul.f32 0.1, %v188_v49 }
  0xf5   :  { %1529 = vmatmul.mubr.msk.f32.vlgmr.msra.gmra.mrb[4].mxu1 %vm226_vm2, %v208_v45  ;;  %vm193_vm7 = vcmp.ge.f32.partialorder %v163_v42, 0.0  ;;  %v201_v47 = vmul.f32 0.1, %v163_v42  ;;  %v205_v52 = vmul.f32 0.1, %v183_v44  ;;  %vm197_vm9 = vcmp.ge.f32.partialorder %v183_v44, 0.0 }
  0xf6   :  { %v210_v50 = vsel %vm194_vm5, %v168_v37, %v202_v46  ;;  %1668 = vmatpush3.bf16.msra.mxu1 %v1958_v18  ;;  %vm198_vm10 = vcmp.ge.f32.partialorder %v188_v49, 0.0  ;;  %v438_v58 = vpop.f32.mrb[4].mxu0 }
  0xf7   :  { %v209_v51 = vsel %vm193_vm7, %v163_v42, %v201_v47  ;;  %1669 = vmatprep.subr.bf16.mxu1 %v1842_v19  ;;  %v213_v56 = vsel %vm197_vm9, %v183_v44, %v205_v52  ;;  %v214_v57 = vsel %vm198_vm10, %v188_v49, %v206_v54  ;;  %v1550_v59 = vpop.f32.mrb[5].mxu0 }
  0xf8   :  { %1531 = vmatprep.mubr.msk.f32.mxu1 %vm226_vm2, %v209_v51 }
  0xf9   :  { %1532 = vmatmul.mubr.msk.f32.gmra.mrb[6].mxu1 %vm226_vm2, %v210_v50 }
  0xfa   :  { %1534 = vmatprep.mubr.msk.f32.mxu1 %vm226_vm2, %v211_v53  ;;  %1671 = vmatpush3.bf16.msra.mxu1 %v1969_v23 }
  0xfb   :  { %1678 = vmatprep.subr.bf16.mxu1 %v1842_v19 }
  0xfd   :  { %1535 = vmatmul.mubr.msk.f32.gmra.mrb[8].mxu1 %vm226_vm2, %v212_v55 }
  0xfe   :  { %1537 = vmatprep.mubr.msk.f32.mxu1 %vm226_vm2, %v213_v56 }
 0x101   :  { %1538 = vmatmul.mubr.msk.f32.gmra.mrb[10].mxu1 %vm226_vm2, %v214_v57 }
 0x102   :  { %1559 = vmatprep.mubr.msk.f32.mxu1 %vm1843_vm1, %v1844_v24 }
 0x1c8   :  { %v1530_v61 = vpop.f32.mrb[4].mxu1 }
 0x1c9   :  { %v323_v62 = vadd.f32 %v1530_v61, %v1405_v60  ;;  %v317_v63 = vpop.f32.mrb[5].mxu1 }
 0x1ca   :  { %v318_v0 = vadd.f32 %v1405_v60, %v317_v63 }
 0x1cc   :  { %v442_v1 = vadd.f32 %v438_v58, %v318_v0  ;;  %v1533_v2 = vpop.f32.mrb[6].mxu1 }
 0x1cd   :  { %v2003_v3 = vadd.f32 %v1533_v2, %v1405_v60  ;;  %v327_v4 = vpop.f32.mrb[7].mxu1 }
 0x1ce   :  { %1727 = vtanh.f32 %v442_v1  ;;  %v2005_v5 = vadd.f32 %v1405_v60, %v327_v4  ;;  %v443_v15 = vmul.f32 0.5, %v442_v1 }
 0x1d0   :  { %v1536_v6 = vpop.f32.mrb[8].mxu1  ;;  %1729 = vtanh.f32 %v443_v15 }
 0x1d1   :  { %v2007_v7 = vadd.f32 %v1536_v6, %v1405_v60  ;;  %v337_v8 = vpop.f32.mrb[9].mxu1 }
 0x1d2   :  { %v2009_v9 = vadd.f32 %v1405_v60, %v337_v8 }
 0x1d4   :  { %v1539_v10 = vpop.f32.mrb[10].mxu1 }
 0x1d5   :  { %v2011_v11 = vadd.f32 %v1539_v10, %v1405_v60  ;;  %v347_v12 = vpop.f32.mrb[11].mxu1 }
 0x1d6   :  { %v2013_v13 = vadd.f32 %v1405_v60, %v347_v12 }
 0x1d8   :  { %v1728_v14 = vpop.eup %1727 }
 0x1d9   :  { %450 = vrot.lane.b32.xlu0 %v1728_v14, %s1845_s5 }
 0x1da   :  { %v1730_v16 = vpop.eup %1729 }
 0x1db   :  { %v445_v17 = vmul.f32 0.5, %v1730_v16 }
 0x1dd   :  { %v446_v20 = vadd.f32 0.5, %v445_v17 }
 0x1df   :  { %v448_v25 = vmul.f32 0.0, %v446_v20 }
 0x24b   :  { %v451_v21 = vpop.permute.xlu0 %450 }
 0x24c   :  { %v453_v22 = vmul.f32 %v451_v21, %v446_v20 }
 0x24e   :  { %455 = vrot.lane.b32.xlu0 %v453_v22, %s1845_s5 }
 0x2c0   :  { %v456_v26 = vpop.permute.xlu0 %455 }
 0x2c1   :  { %v458_v27 = vadd.f32 %v456_v26, %v448_v25 }
 0x2c3   :  { %1731 = vtanh.f32 %v458_v27 }
 0x2cd   :  { %v1732_v28 = vpop.eup %1731 }
 0x2ce   :  { %461 = vrot.lane.b32.xlu1 %v1732_v28, %s1845_s5 }
 0x340   :  { %v462_v29 = vpop.permute.xlu1 %461 }
 0x341   :  { %v464_v30 = vmul.f32 %v462_v29, %v446_v20 }
 0x343   :  { %466 = vrot.lane.b32.xlu1 %v464_v30, %s1846_s29 }
 0x3b5   :  { %v467_v31 = vpop.permute.xlu1 %466 }
 0x3b6   :  { %469 = vst.msk [vmem:[#allocation3] sm:$0xff] %vm226_vm2, %v467_v31  ;;  %1560 = vmatmul.mubr.msk.f32.vlgmr.msra.gmra.mrb[12].mxu1 %vm226_vm2, %v467_v31 }
 0x3b7   :  { %1680 = vmatpush3.bf16.msra.mxu1 %v1958_v18  ;;  %1581 = vmatprep.mubr.msk.f32.mxu1 %vm1843_vm1, %v1844_v24 }
 0x3b8   :  { %1681 = vmatprep.subr.bf16.mxu1 %v1842_v19 }
 0x3bb   :  { %1683 = vmatpush3.bf16.msra.mxu1 %v1969_v23 }
 0x3bc   :  { %1690 = vmatprep.subr.bf16.mxu1 %v1842_v19 }
 0x489   :  { %v540_v32 = vpop.f32.mrb[12].mxu1 }
 0x48a   :  { %v544_v33 = vadd.f32 %v540_v32, %v323_v62  ;;  %v1561_v34 = vpop.f32.mrb[13].mxu1 }
 0x48c   :  { %1733 = vtanh.f32 %v544_v33  ;;  %v545_v36 = vmul.f32 0.5, %v544_v33 }
 0x48e   :  { %1735 = vtanh.f32 %v545_v36 }
 0x496   :  { %v1734_v35 = vpop.eup %1733 }
 0x497   :  { %552 = vrot.lane.b32.xlu0 %v1734_v35, %s1845_s5 }
 0x498   :  { %v1736_v37 = vpop.eup %1735 }
 0x499   :  { %v547_v38 = vmul.f32 0.5, %v1736_v37 }
 0x49b   :  { %v548_v39 = vadd.f32 0.5, %v547_v38 }
 0x49d   :  { %v550_v42 = vmul.f32 %v548_v39, %v458_v27 }
 0x509   :  { %v553_v40 = vpop.permute.xlu0 %552 }
 0x50a   :  { %v555_v41 = vmul.f32 %v553_v40, %v548_v39 }
 0x50c   :  { %557 = vrot.lane.b32.xlu1 %v555_v41, %s1845_s5 }
 0x57e   :  { %v558_v43 = vpop.permute.xlu1 %557 }
 0x57f   :  { %v560_v44 = vadd.f32 %v558_v43, %v550_v42 }
 0x581   :  { %1737 = vtanh.f32 %v560_v44 }
 0x58b   :  { %v1738_v45 = vpop.eup %1737 }
 0x58c   :  { %563 = vrot.lane.b32.xlu0 %v1738_v45, %s1845_s5 }
 0x5fe   :  { %v564_v46 = vpop.permute.xlu0 %563 }
 0x5ff   :  { %v566_v47 = vmul.f32 %v564_v46, %v548_v39 }
 0x601   :  { %568 = vrot.lane.b32.xlu1 %v566_v47, %s1846_s29 }
 0x673   :  { %v569_v48 = vpop.permute.xlu1 %568 }
 0x674   :  { %572 = vst.msk [vmem:[#allocation3 + $0x8] sm:$0xff] %vm226_vm2, %v569_v48  ;;  %1571 = vmatmul.mubr.msk.f32.vlgmr.msra.gmra.mrb[6].mxu0 %vm226_vm2, %v569_v48 }
 0x675   :  { %1686 = vmatpush3.bf16.msra.mxu0 %v1958_v18  ;;  %1592 = vmatprep.mubr.msk.f32.mxu0 %vm1843_vm1, %v1844_v24 }
 0x676   :  { %1687 = vmatprep.subr.bf16.mxu0 %v1842_v19 }
 0x679   :  { %1689 = vmatpush3.bf16.msra.mxu0 %v1969_v23 }
 0x67a   :  { %1696 = vmatprep.subr.bf16.mxu0 %v1842_v19 }
 0x747   :  { %v643_v49 = vpop.f32.mrb[6].mxu0 }
 0x748   :  { %v647_v50 = vadd.f32 %v643_v49, %v2005_v5  ;;  %v1572_v51 = vpop.f32.mrb[7].mxu0 }
 0x74a   :  { %1739 = vtanh.f32 %v647_v50  ;;  %v648_v53 = vmul.f32 0.5, %v647_v50 }
 0x74c   :  { %1741 = vtanh.f32 %v648_v53 }
 0x754   :  { %v1740_v52 = vpop.eup %1739 }
 0x755   :  { %655 = vrot.lane.b32.xlu0 %v1740_v52, %s1845_s5  ;;  %v1200_v52 = vld [vmem:[%s2154_s6 + $0x8] sm:$0xff] }
 0x756   :  { %v1742_v54 = vpop.eup %1741 }
 0x757   :  { %v650_v55 = vmul.f32 0.5, %v1742_v54 }
 0x759   :  { %v651_v56 = vadd.f32 0.5, %v650_v55 }
 0x75b   :  { %v653_v59 = vmul.f32 %v651_v56, %v560_v44 }
 0x7c7   :  { %v656_v57 = vpop.permute.xlu0 %655 }
 0x7c8   :  { %v658_v58 = vmul.f32 %v656_v57, %v651_v56  ;;  %v1201_v57 = vld [vmem:[%s2154_s6 + $0x10] sm:$0xff] }
 0x7ca   :  { %660 = vrot.lane.b32.xlu1 %v658_v58, %s1845_s5  ;;  %v1202_v58 = vld [vmem:[%s2154_s6 + $0x18] sm:$0xff] }
 0x83c   :  { %v661_v60 = vpop.permute.xlu1 %660 }
 0x83d   :  { %v663_v61 = vadd.f32 %v661_v60, %v653_v59  ;;  %v1712_v59 = vpack.c.bf16 %v1202_v58, %v1201_v57 }
 0x83f   :  { %1743 = vtanh.f32 %v663_v61 }
 0x849   :  { %v1744_v62 = vpop.eup %1743 }
 0x84a   :  { %666 = vrot.lane.b32.xlu0 %v1744_v62, %s1845_s5  ;;  %v1192_v62 = vld [vmem:[#allocation3 + $0x8] sm:$0xff] }
 0x8bc   :  { %v667_v63 = vpop.permute.xlu0 %666 }
 0x8bd   :  { %v669_v0 = vmul.f32 %v667_v63, %v651_v56 }
 0x8bf   :  { %671 = vrot.lane.b32.xlu1 %v669_v0, %s1846_s29 }
 0x931   :  { %v672_v1 = vpop.permute.xlu1 %671 }
 0x932   :  { %675 = vst.msk [vmem:[#allocation3 + $0x10] sm:$0xff] %vm226_vm2, %v672_v1  ;;  %1582 = vmatmul.mubr.msk.f32.vlgmr.msra.gmra.mrb[14].mxu1 %vm226_vm2, %v672_v1 }
 0x933   :  { %1692 = vmatpush3.bf16.msra.mxu1 %v1958_v18  ;;  %1603 = vmatprep.mubr.msk.f32.mxu1 %vm1843_vm1, %v1844_v24 }
 0x934   :  { %1693 = vmatprep.subr.bf16.mxu1 %v1842_v19 }
 0x937   :  { %1695 = vmatpush3.bf16.msra.mxu1 %v1969_v23 }
 0x938   :  { %1702 = vmatprep.subr.bf16.mxu1 %v1842_v19 }
 0x939   :  { %v1193_v63 = vld [vmem:[#allocation3 + $0x10] sm:$0xff] }
 0xa05   :  { %v746_v2 = vpop.f32.mrb[14].mxu1 }
 0xa06   :  { %v750_v4 = vadd.f32 %v746_v2, %v2003_v3  ;;  %v1583_v5 = vpop.f32.mrb[15].mxu1 }
 0xa08   :  { %1745 = vtanh.f32 %v750_v4  ;;  %v751_v8 = vmul.f32 0.5, %v750_v4 }
 0xa0a   :  { %1747 = vtanh.f32 %v751_v8  ;;  %v2108_v8 = vld [vmem:[%s2155_s7] ss:$0 sm:$0xff]  ;;  %s1847_s7 = smov [#allocation7]  }
 0xa0b   :  { %s1384_s19 = sshll.u32 %s1847_s7, 4  ;;  %s1385_s19 = int_to_ptr.vmem [resolvable:$true] %s1384_s19 }
 0xa0c   :  { %s1813_s20 = scalar_lea.vmem %s1385_s19, 1024  ;;  %p1818_p9 = scmp.lt.s32.totalorder %s1385_s19, %s1385_s19 }
 0xa0d   :  { %p1814_p8 = scmp.ne.s32.totalorder %s1385_s19, %s1813_s20  ;;  %p1819_p10 = scmp.lt.s32.totalorder %s1813_s20, %s1813_s20 }
 0xa0f   :  { %p1820_p11 = por %p1819_p10, %p1818_p9 }
 0xa11   :  { %p1821_p12 = pnand %p1820_p11, %p1814_p8 }
 0xa12   :  { %v1746_v6 = vpop.eup %1745 }
 0xa13   :  { %758 = vrot.lane.b32.xlu0 %v1746_v6, %s1845_s5 }
 0xa14   :  { %v1748_v10 = vpop.eup %1747 }
 0xa15   :  { %v753_v12 = vmul.f32 0.5, %v1748_v10 }
 0xa17   :  { %v754_v14 = vadd.f32 0.5, %v753_v12 }
 0xa19   :  { %v756_v17 = vmul.f32 %v754_v14, %v663_v61  ;;  %v1191_v61 = vld [vmem:[#allocation3] sm:$0xff] }
 0xa85   :  { %v759_v15 = vpop.permute.xlu0 %758 }
 0xa86   :  { %v761_v16 = vmul.f32 %v759_v15, %v754_v14 }
 0xa88   :  { %763 = vrot.lane.b32.xlu1 %v761_v16, %s1845_s5 }
 0xafa   :  { %v764_v20 = vpop.permute.xlu1 %763 }
 0xafb   :  { %v766_v21 = vadd.f32 %v764_v20, %v756_v17 }
 0xafd   :  { %1749 = vtanh.f32 %v766_v21 }
 0xb07   :  { %v1750_v22 = vpop.eup %1749 }
 0xb08   :  { %769 = vrot.lane.b32.xlu0 %v1750_v22, %s1845_s5 }
 0xb7a   :  { %v770_v3 = vpop.permute.xlu0 %769 }
 0xb7b   :  { %v772_v25 = vmul.f32 %v770_v3, %v754_v14 }
 0xb7d   :  { %774 = vrot.lane.b32.xlu1 %v772_v25, %s1846_s29 }
 0xbef   :  { %v775_v26 = vpop.permute.xlu1 %774 }
 0xbf0   :  { %778 = vst.msk [vmem:[#allocation3 + $0x18] sm:$0xff] %vm226_vm2, %v775_v26  ;;  %1593 = vmatmul.mubr.msk.f32.vlgmr.msra.gmra.mrb[8].mxu0 %vm226_vm2, %v775_v26 }
 0xbf1   :  { %1698 = vmatpush3.bf16.msra.mxu0 %v1958_v18  ;;  %1614 = vmatprep.mubr.msk.f32.mxu0 %vm1843_vm1, %v1844_v24 }
 0xbf2   :  { %1699 = vmatprep.subr.bf16.mxu0 %v1842_v19 }
 0xbf5   :  { %1701 = vmatpush3.bf16.msra.mxu0 %v1969_v23 }
 0xbf7   :  { %v1194_v0 = vld [vmem:[#allocation3 + $0x18] sm:$0xff] }
 0xcc3   :  { %v849_v27 = vpop.f32.mrb[8].mxu0 }
 0xcc4   :  { %v853_v28 = vadd.f32 %v849_v27, %v2009_v9  ;;  %v1594_v29 = vpop.f32.mrb[9].mxu0 }
 0xcc6   :  { %1751 = vtanh.f32 %v853_v28  ;;  %v854_v31 = vmul.f32 0.5, %v853_v28 }
 0xcc8   :  { %1753 = vtanh.f32 %v854_v31 }
 0xcd0   :  { %v1752_v30 = vpop.eup %1751 }
 0xcd1   :  { %861 = vrot.lane.b32.xlu0 %v1752_v30, %s1845_s5 }
 0xcd2   :  { %v1754_v32 = vpop.eup %1753 }
 0xcd3   :  { %v856_v33 = vmul.f32 0.5, %v1754_v32 }
 0xcd5   :  { %v857_v34 = vadd.f32 0.5, %v856_v33 }
 0xcd7   :  { %v859_v37 = vmul.f32 %v857_v34, %v766_v21 }
 0xd43   :  { %v862_v35 = vpop.permute.xlu0 %861 }
 0xd44   :  { %v864_v36 = vmul.f32 %v862_v35, %v857_v34 }
 0xd46   :  { %866 = vrot.lane.b32.xlu1 %v864_v36, %s1845_s5 }
 0xdb8   :  { %v867_v38 = vpop.permute.xlu1 %866 }
 0xdb9   :  { %v869_v39 = vadd.f32 %v867_v38, %v859_v37 }
 0xdbb   :  { %1755 = vtanh.f32 %v869_v39 }
 0xdc5   :  { %v1756_v40 = vpop.eup %1755 }
 0xdc6   :  { %872 = vrot.lane.b32.xlu0 %v1756_v40, %s1845_s5 }
 0xe38   :  { %v873_v9 = vpop.permute.xlu0 %872 }
 0xe39   :  { %v875_v41 = vmul.f32 %v873_v9, %v857_v34 }
 0xe3b   :  { %877 = vrot.lane.b32.xlu1 %v875_v41, %s1846_s29 }
 0xead   :  { %v878_v42 = vpop.permute.xlu1 %877 }
 0xeae   :  { %881 = vst.msk [vmem:[#allocation3 + $0x20] sm:$0xff] %vm226_vm2, %v878_v42  ;;  %1604 = vmatmul.mubr.msk.f32.vlgmr.msra.gmra.mrb[16].mxu1 %vm226_vm2, %v878_v42 }
 0xeaf   :  { %1704 = vmatpush3.bf16.msra.mxu1 %v1958_v18  ;;  %1625 = vmatprep.mubr.msk.f32.mxu1 %vm1843_vm1, %v1844_v24 }
 0xeb0   :  { %1705 = vmatprep.subr.bf16.mxu1 %v1842_v19 }
 0xeb3   :  { %1707 = vmatpush3.bf16.msra.mxu1 %v1969_v23 }
 0xeb5   :  { %v1195_v1 = vld [vmem:[#allocation3 + $0x20] sm:$0xff] }
 0xf81   :  { %v952_v43 = vpop.f32.mrb[16].mxu1 }
 0xf82   :  { %v956_v44 = vadd.f32 %v952_v43, %v2007_v7  ;;  %v1605_v45 = vpop.f32.mrb[17].mxu1  ;;  %v1199_v7 = vld [vmem:[%s2154_s6] sm:$0xff] }
 0xf83   :  { %v1708_v53 = vpack.c.bf16 %v1200_v52, %v1199_v7 }
 0xf84   :  { %1757 = vtanh.f32 %v956_v44  ;;  %v957_v47 = vmul.f32 0.5, %v956_v44 }
 0xf85   :  { %1709 = vmatprep.subr.bf16.mxu0 %v1708_v53 }
 0xf86   :  { %1759 = vtanh.f32 %v957_v47 }
 0xf8e   :  { %v1758_v46 = vpop.eup %1757 }
 0xf8f   :  { %964 = vrot.lane.b32.xlu0 %v1758_v46, %s1845_s5 }
 0xf90   :  { %v1760_v48 = vpop.eup %1759 }
 0xf91   :  { %v959_v49 = vmul.f32 0.5, %v1760_v48 }
 0xf93   :  { %v960_v18 = vadd.f32 0.5, %v959_v49 }
 0xf95   :  { %v962_v19 = vmul.f32 %v960_v18, %v869_v39 }
0x1001   :  { %v965_v50 = vpop.permute.xlu0 %964 }
0x1002   :  { %v967_v51 = vmul.f32 %v965_v50, %v960_v18 }
0x1004   :  { %969 = vrot.lane.b32.xlu1 %v967_v51, %s1845_s5 }
0x1076   :  { %v970_v24 = vpop.permute.xlu1 %969 }
0x1077   :  { %v2079_v23 = vadd.f32 %v970_v24, %v962_v19 }
0x1079   :  { %1761 = vtanh.f32 %v2079_v23 }
0x1083   :  { %v1762_v54 = vpop.eup %1761 }
0x1084   :  { %975 = vrot.lane.b32.xlu0 %v1762_v54, %s1845_s5 }
0x10f6   :  { %v976_v55 = vpop.permute.xlu0 %975 }
0x10f7   :  { %v978_v56 = vmul.f32 %v976_v55, %v960_v18 }
0x10f9   :  { %980 = vrot.lane.b32.xlu1 %v978_v56, %s1846_s29 }
0x116b   :  { %v981_v60 = vpop.permute.xlu1 %980 }
0x116c   :  { %984 = vst.msk [vmem:[#allocation3 + $0x28] sm:$0xff] %vm226_vm2, %v981_v60  ;;  %1615 = vmatmul.mubr.msk.f32.vlgmr.msra.gmra.mrb[10].mxu0 %vm226_vm2, %v981_v60 }
0x116d   :  { %1711 = vmatpush3.bf16.msra.mxu0 %v1708_v53  ;;  %1636 = vmatprep.mubr.msk.f32.mxu0 %vm226_vm2, %v1191_v61 }
0x116e   :  { %1713 = vmatprep.subr.bf16.mxu0 %v1712_v59 }
0x1171   :  { %1715 = vmatpush3.bf16.msra.mxu0 %v1712_v59 }
0x1173   :  { %v1196_v2 = vld [vmem:[#allocation3 + $0x28] sm:$0xff] }
0x1174   :  { %1637 = vmatmul.mubr.msk.f32.vlgmr.msra.gmra.mrb[12].mxu0 %vm226_vm2, %v1192_v62 }
0x1175   :  { %1639 = vmatprep.mubr.msk.f32.mxu0 %vm226_vm2, %v1193_v63 }
0x1178   :  { %1640 = vmatmul.mubr.msk.f32.gmra.mrb[14].mxu0 %vm226_vm2, %v1194_v0 }
0x1179   :  { %1642 = vmatprep.mubr.msk.f32.mxu0 %vm226_vm2, %v1195_v1 }
0x117c   :  { %1643 = vmatmul.mubr.msk.f32.gmra.mrb[16].mxu0 %vm226_vm2, %v1196_v2 }
0x123f   :  { %v1055_v4 = vpop.f32.mrb[10].mxu0 }
0x1240   :  { %v1059_v5 = vadd.f32 %v1055_v4, %v2013_v13  ;;  %v1616_v6 = vpop.f32.mrb[11].mxu0 }
0x1242   :  { %1763 = vtanh.f32 %v1059_v5  ;;  %v1060_v18 = vmul.f32 0.5, %v1059_v5 }
0x1247   :  { %v1638_v10 = vpop.f32.mrb[12].mxu0 }
0x1248   :  { %v1306_v12 = vadd.f32 %v1638_v10, %v2108_v8  ;;  %v1300_v14 = vpop.f32.mrb[13].mxu0 }
0x1249   :  { %v1301_v15 = vadd.f32 %v2108_v8, %v1300_v14 }
0x124a   :  { %v1340_v16 = vmul.f32 0.5, %v1306_v12 }
0x124b   :  { %v1339_v17 = vmul.f32 0.5, %v1301_v15  ;;  %v1641_v20 = vpop.f32.mrb[14].mxu0 }
0x124c   :  { %v1764_v21 = vpop.eup %1763  ;;  %1765 = vtanh.f32 %v1340_v16  ;;  %v1316_v13 = vadd.f32 %v1641_v20, %v2108_v8  ;;  %v1310_v22 = vpop.f32.mrb[15].mxu0 }
0x124d   :  { %1767 = vtanh.f32 %v1339_v17  ;;  %v1311_v3 = vadd.f32 %v2108_v8, %v1310_v22  ;;  %1067 = vrot.lane.b32.xlu0 %v1764_v21, %s1845_s5 }
0x124e   :  { %v1342_v25 = vmul.f32 0.5, %v1316_v13 }
0x124f   :  { %v1341_v26 = vmul.f32 0.5, %v1311_v3  ;;  %v1644_v27 = vpop.f32.mrb[16].mxu0 }
0x1250   :  { %1769 = vtanh.f32 %v1342_v25  ;;  %v1326_v28 = vadd.f32 %v1644_v27, %v2108_v8  ;;  %v1320_v29 = vpop.f32.mrb[17].mxu0 }
0x1251   :  { %1771 = vtanh.f32 %v1341_v26  ;;  %v1321_v30 = vadd.f32 %v2108_v8, %v1320_v29 }
0x1252   :  { %v1344_v31 = vmul.f32 0.5, %v1326_v28 }
0x1253   :  { %v1343_v32 = vmul.f32 0.5, %v1321_v30 }
0x1254   :  { %1773 = vtanh.f32 %v1344_v31 }
0x1255   :  { %1775 = vtanh.f32 %v1343_v32 }
0x1256   :  { %v1766_v33 = vpop.eup %1765  ;;  %1777 = vtanh.f32 %v1060_v18 }
0x1257   :  { %v1768_v34 = vpop.eup %1767  ;;  %v1356_v35 = vmul.f32 0.5, %v1766_v33 }
0x1258   :  { %v1355_v36 = vmul.f32 0.5, %v1768_v34 }
0x1259   :  { %v1364_v37 = vadd.f32 0.5, %v1356_v35 }
0x125a   :  { %v1770_v38 = vpop.eup %1769  ;;  %v1363_v39 = vadd.f32 0.5, %v1355_v36 }
0x125b   :  { %v1772_v40 = vpop.eup %1771  ;;  %1372 = vst [vmem:[#allocation7 + $0x8] sm:$0xff] %v1364_v37  ;;  %v1358_v9 = vmul.f32 0.5, %v1770_v38 }
0x125c   :  { %1371 = vst [vmem:[#allocation7] sm:$0xff] %v1363_v39  ;;  %v1357_v41 = vmul.f32 0.5, %v1772_v40 }
0x125d   :  { %v1366_v42 = vadd.f32 0.5, %v1358_v9 }
0x125e   :  { %v1774_v43 = vpop.eup %1773  ;;  %v1365_v44 = vadd.f32 0.5, %v1357_v41 }
0x125f   :  { %v1776_v45 = vpop.eup %1775  ;;  %1374 = vst [vmem:[#allocation7 + $0x18] sm:$0xff] %v1366_v42  ;;  %v1360_v46 = vmul.f32 0.5, %v1774_v43 }
0x1260   :  { %1373 = vst [vmem:[#allocation7 + $0x10] sm:$0xff] %v1365_v44  ;;  %v1359_v47 = vmul.f32 0.5, %v1776_v45  ;;  %v1778_v50 = vpop.eup %1777 }
0x1261   :  { %v1368_v48 = vadd.f32 0.5, %v1360_v46  ;;  %v1062_v51 = vmul.f32 0.5, %v1778_v50 }
0x1262   :  { %v1367_v49 = vadd.f32 0.5, %v1359_v47 }
0x1263   :  { %1376 = vst [vmem:[#allocation7 + $0x28] sm:$0xff] %v1368_v48  ;;  %v1063_v19 = vadd.f32 0.5, %v1062_v51 }
0x1264   :  { %1375 = vst [vmem:[#allocation7 + $0x20] sm:$0xff] %v1367_v49 }
0x1265   :  { %v1065_v52 = vmul.f32 %v1063_v19, %v2079_v23 }
0x12bf   :  { %v1068_v24 = vpop.permute.xlu0 %1067 }
0x12c0   :  { %v1070_v7 = vmul.f32 %v1068_v24, %v1063_v19 }
0x12c2   :  { %1072 = vrot.lane.b32.xlu1 %v1070_v7, %s1845_s5 }
0x1334   :  { %v1073_v53 = vpop.permute.xlu1 %1072 }
0x1335   :  { %v1075_v54 = vadd.f32 %v1073_v53, %v1065_v52 }
0x1337   :  { %1779 = vtanh.f32 %v1075_v54 }
0x1341   :  { %v1780_v55 = vpop.eup %1779 }
0x1342   :  { %1078 = vrot.lane.b32.xlu0 %v1780_v55, %s1845_s5 }
0x13b4   :  { %v1079_v56 = vpop.permute.xlu0 %1078 }
0x13b5   :  { %v1081_v57 = vmul.f32 %v1079_v56, %v1063_v19 }
0x13b7   :  { %1083 = vrot.lane.b32.xlu1 %v1081_v57, %s1846_s29 }
0x1429   :  { %v1084_v58 = vpop.permute.xlu1 %1083 }
0x142a   :  { %1087 = vst.msk [vmem:[#allocation3 + $0x30] sm:$0xff] %vm226_vm2, %v1084_v58  ;;  %1626 = vmatmul.mubr.msk.f32.vlgmr.msra.gmra.mrb[18].mxu1 %vm226_vm2, %v1084_v58 }
0x1431   :  { %v1197_v59 = vld [vmem:[#allocation3 + $0x30] sm:$0xff] }
0x1432   :  { %1645 = vmatprep.mubr.msk.f32.mxu0 %vm226_vm2, %v1197_v59 }
0x14fd   :  { %v1158_v60 = vpop.f32.mrb[18].mxu1 }
0x14fe   :  { %v1162_v23 = vadd.f32 %v1158_v60, %v2011_v11  ;;  %v1627_v61 = vpop.f32.mrb[19].mxu1 }
0x1500   :  { %1781 = vtanh.f32 %v1162_v23  ;;  %v1163_v63 = vmul.f32 0.5, %v1162_v23 }
0x1502   :  { %1783 = vtanh.f32 %v1163_v63 }
0x150a   :  { %v1782_v62 = vpop.eup %1781 }
0x150b   :  { %1170 = vrot.lane.b32.xlu0 %v1782_v62, %s1845_s5 }
0x150c   :  { %v1784_v0 = vpop.eup %1783 }
0x150d   :  { %v1165_v1 = vmul.f32 0.5, %v1784_v0 }
0x150f   :  { %v1166_v2 = vadd.f32 0.5, %v1165_v1 }
0x1511   :  { %v1168_v6 = vmul.f32 %v1166_v2, %v1075_v54 }
0x157d   :  { %v1171_v4 = vpop.permute.xlu0 %1170 }
0x157e   :  { %v1173_v5 = vmul.f32 %v1171_v4, %v1166_v2 }
0x1580   :  { %1175 = vrot.lane.b32.xlu1 %v1173_v5, %s1845_s5 }
0x15f2   :  { %v1176_v10 = vpop.permute.xlu1 %1175 }
0x15f3   :  { %v1178_v12 = vadd.f32 %v1176_v10, %v1168_v6 }
0x15f5   :  { %1785 = vtanh.f32 %v1178_v12 }
0x15ff   :  { %v1786_v14 = vpop.eup %1785 }
0x1600   :  { %1181 = vrot.lane.b32.xlu0 %v1786_v14, %s1845_s5 }
0x1672   :  { %v1182_v11 = vpop.permute.xlu0 %1181 }
0x1673   :  { %v1184_v15 = vmul.f32 %v1182_v11, %v1166_v2 }
0x1675   :  { %1186 = vrot.lane.b32.xlu1 %v1184_v15, %s1846_s29 }
0x16e7   :  { %v1187_v16 = vpop.permute.xlu1 %1186 }
0x16e8   :  { %1190 = vst.msk [vmem:[#allocation3 + $0x38] sm:$0xff] %vm226_vm2, %v1187_v16 }
0x16ef   :  { %v1198_v17 = vld [vmem:[#allocation3 + $0x38] sm:$0xff] }
0x16f0   :  { %1646 = vmatmul.mubr.msk.f32.gmra.mrb[18].mxu0 %vm226_vm2, %v1198_v17 }
0x17c3   :  { %v1647_v20 = vpop.f32.mrb[18].mxu0 }
0x17c4   :  { %v1336_v21 = vadd.f32 %v1647_v20, %v2108_v8  ;;  %v1330_v13 = vpop.f32.mrb[19].mxu0 }
0x17c5   :  { %v1331_v22 = vadd.f32 %v2108_v8, %v1330_v13 }
0x17c6   :  { %v1346_v3 = vmul.f32 0.5, %v1336_v21 }
0x17c7   :  { %v1345_v25 = vmul.f32 0.5, %v1331_v22 }
0x17c8   :  { %1787 = vtanh.f32 %v1346_v3 }
0x17c9   :  { %1789 = vtanh.f32 %v1345_v25 }
0x17d2   :  { %v1788_v26 = vpop.eup %1787 }
0x17d3   :  { %v1790_v27 = vpop.eup %1789  ;;  %v1362_v28 = vmul.f32 0.5, %v1788_v26 }
0x17d4   :  { %v1361_v29 = vmul.f32 0.5, %v1790_v27 }
0x17d5   :  { %v1370_v30 = vadd.f32 0.5, %v1362_v28 }
0x17d6   :  { %v1369_v31 = vadd.f32 0.5, %v1361_v29 }
0x17d7   :  { %1378 = vst [vmem:[#allocation7 + $0x38] sm:$0xff] %v1370_v30 }
0x17d8   :  { %1377 = vst [vmem:[#allocation7 + $0x30] sm:$0xff] %v1369_v31 }
0x17d9   :  { %1824 = shalt.err (!%p1821_p12)
}
0x17da   :  { %s1825_s23 = scalar_lea.hbm %s2156_s8, 1024 }
0x17db   :  { %p1826_p13 = scmp.ne.s32.totalorder %s2156_s8, %s1825_s23  ;;  %p1829_p0 = scmp.lt.u32.totalorder %s1825_s23, %s2156_s8 }
0x17dd   :  { %p1831_p1 = pnand %p1829_p0, %p1826_p13 }
0x17df   :  { %1834 = shalt.err (!%p1831_p1)
}
0x17e0   :  { %1390 = dma.vmem_to_hbm [thread:$0]  %s1385_s19, 1024, %s2156_s8, [#allocation6], %s1840_s15, %s1840_s15, %s1841_s16  }
0x17e1   :  { %1837 = dma.done.wait [#allocation6], 1024  }
0x17e2   :  { %1838 = vsyncadd [#allocation6], 4294966272 }
0x17e3   :  { %1394 = vsyncpa [#allocation5], 1 }
0x17e4   :  { %1395 = vsyncpa [#allocation6], 1 }

</bundles_post_ra>
